<compile_context>
chip_gen: v7x
topology: tpu7x:2x2x1
jax: 0.10.0
libtpu: 0.0.40
codegen_flags: <defaults>
</compile_context>

<pallas_src>
import functools

import jax
import jax.numpy as jnp
from jax import lax
from jax.experimental import pallas as pl
from jax.experimental.pallas import tpu as pltpu

_LANES = 128


def _round_up(v, m):
    return ((v + m - 1) // m) * m


def _device_kind():
    try:
        return jax.devices()[0].device_kind.lower()
    except Exception:
        return ""


def _chip_config():
    """(tile_bytes_per_input_block, n_splits, vmem_limit_bytes, try_core_parallel)."""
    kind = _device_kind()
    if "v7" in kind or "7x" in kind:
        # 2 TensorCores, ~3.2 TB/s HBM, 64 MiB VMEM: big blocks + 2-way core split.
        return 8 << 20, 2, 48 << 20, True
    if "v6" in kind:
        # 1 TC, 32 MiB default scoped VMEM: 4 MiB blocks double-buffer to 16 MiB.
        return 4 << 20, 1, None, False
    # v5e and conservative default (16 MiB default scoped VMEM).
    return 2 << 20, 1, None, False


def _rmse_kernel(x_ref, y_ref, out_ref, *, tile_rows, stripe_rows,
                 tiles_per_split, total_rows, need_mask):
    p = pl.program_id(0)
    j = pl.program_id(1)

    @pl.when(j == 0)
    def _():
        out_ref[...] = jnp.zeros_like(out_ref)

    t = p * tiles_per_split + j
    n_stripes = tile_rows // stripe_rows
    unroll = True if n_stripes <= 8 else 4

    def accumulate(masked):
        def body(s, acc):
            r0 = pl.multiple_of(s * stripe_rows, stripe_rows)
            d = (x_ref[pl.ds(r0, stripe_rows), :].astype(jnp.float32)
                 - y_ref[pl.ds(r0, stripe_rows), :].astype(jnp.float32))
            if masked:
                # Zero contributions from rows past the true extent (ragged last
                # tile / clamped out-of-range tile of the parallel split).
                row = jax.lax.broadcasted_iota(jnp.int32, (stripe_rows, _LANES), 0)
                valid = (t * tile_rows + r0 + row) < total_rows
                d = jnp.where(valid, d, 0.0)
            sq = d * d
            # Fold the stripe into an (8,128) vreg-shaped partial: pure VPU adds,
            # no cross-lane reduce, hidden under the DMA shadow.
            return acc + jnp.sum(sq.reshape(stripe_rows // 8, 8, _LANES), axis=0)

        return lax.fori_loop(0, n_stripes, body,
                             jnp.zeros((8, _LANES), jnp.float32), unroll=unroll)

    if need_mask:
        ragged = (t + 1) * tile_rows > total_rows
        partial = lax.cond(ragged,
                           lambda: accumulate(True),
                           lambda: accumulate(False))
    else:
        partial = accumulate(False)

    out_ref[...] += partial[None, :, :]


def _rmse_pallas(x, y):
    n = x.size
    itemsize = jnp.dtype(x.dtype).itemsize
    sublane = max(8, 32 // itemsize)          # 8 f32 / 16 bf16 / 32 int8-fp8
    tile_bytes, n_splits, vmem_limit, try_core_parallel = _chip_config()

    xf = x.reshape(-1)
    yf = y.reshape(-1)

    # Pad only to a (sublane * 128)-element multiple (tiny; zeros contribute 0).
    rows = pl.cdiv(n, _LANES)
    rows = _round_up(rows, sublane)
    padded = rows * _LANES
    if padded != n:
        xf = jnp.pad(xf, (0, padded - n))
        yf = jnp.pad(yf, (0, padded - n))

    x2d = xf.reshape(rows, _LANES)
    y2d = yf.reshape(rows, _LANES)

    # Dtype-scaled row tile keeping each DMA block ~tile_bytes, sublane-aligned.
    max_tile_rows = max(sublane, _round_up(tile_bytes // (_LANES * itemsize), sublane))
    tile_rows = min(max_tile_rows, rows)
    total_tiles = pl.cdiv(rows, tile_rows)
    if total_tiles < n_splits:
        n_splits = 1                          # no duplicated/masked extra tile
    tiles_per_split = pl.cdiv(total_tiles, n_splits)
    need_mask = (rows % tile_rows != 0) or (n_splits * tiles_per_split != total_tiles)

    # <=512-row stripes for the in-kernel reduction (512 divides every cap tile).
    stripe_rows = 512 if tile_rows % 512 == 0 else tile_rows

    def in_map(p, j):
        # Clamp so overhanging tiles of the parallel split never index OOB;
        # their (re-read) data is fully masked to zero inside the kernel.
        return (jnp.minimum(p * tiles_per_split + j, total_tiles - 1), 0)

    if n_splits > 1 and try_core_parallel:
        sem_candidates = ((pltpu.CORE_PARALLEL, pltpu.ARBITRARY),
                          (pltpu.PARALLEL, pltpu.ARBITRARY))
    else:
        sem_candidates = ((pltpu.PARALLEL, pltpu.ARBITRARY),)

    cost = pl.CostEstimate(
        flops=3 * n,
        transcendentals=0,
        bytes_accessed=2 * padded * itemsize + n_splits * 8 * _LANES * 4,
    )

    compiler_kwargs = {}
    if vmem_limit is not None:
        compiler_kwargs["vmem_limit_bytes"] = vmem_limit

    kernel = functools.partial(
        _rmse_kernel,
        tile_rows=tile_rows,
        stripe_rows=stripe_rows,
        tiles_per_split=tiles_per_split,
        total_rows=rows,
        need_mask=need_mask,
    )

    def run(dim_sems):
        return pl.pallas_call(
            kernel,
            out_shape=jax.ShapeDtypeStruct((n_splits, 8, _LANES), jnp.float32),
            grid_spec=pltpu.PrefetchScalarGridSpec(
                num_scalar_prefetch=0,
                grid=(n_splits, tiles_per_split),
                in_specs=[
                    pl.BlockSpec((tile_rows, _LANES), in_map),
                    pl.BlockSpec((tile_rows, _LANES), in_map),
                ],
                out_specs=pl.BlockSpec((1, 8, _LANES), lambda p, j: (p, 0, 0)),
            ),
            compiler_params=pltpu.CompilerParams(
                dimension_semantics=dim_sems, **compiler_kwargs),
            cost_estimate=cost,
        )(x2d, y2d)

    partials = None
    last_err = None
    for sems in sem_candidates:
        try:
            partials = jax.block_until_ready(run(sems))
            break
        except Exception as e:  # CORE_PARALLEL unsupported -> fall back to PARALLEL
            last_err = e
    if partials is None:
        raise last_err

    # Single cheap cross-lane reduce + mean + sqrt over n_splits x 8 x 128 floats.
    return jnp.sqrt(jnp.sum(partials) / jnp.float32(n))


def rmse_loss(x, y, *, min_pallas_elements=1 << 20):
    """RMSE over all elements of x and y: sqrt(mean((x - y)**2))."""
    assert x.shape == y.shape, "x and y must have the same shape"
    n = x.size
    if n < min_pallas_elements:
        # Tiny loss tensors: launch + grid-step overhead dominate; let XLA fuse.
        d = (x.astype(jnp.float32) - y.astype(jnp.float32)).reshape(-1)
        return jnp.sqrt(jnp.mean(d * d))
    return _rmse_pallas(x, y)


if __name__ == "__main__":
    key = jax.random.PRNGKey(0)
    kx, ky, kx2, ky2 = jax.random.split(key, 4)

    # Small NCHW-like shape, consistent with typical loss inputs.
    shape = (2, 4, 16, 16)
    x = jax.random.normal(kx, shape, dtype=jnp.float32)
    y = jax.random.normal(ky, shape, dtype=jnp.float32)

    # Force the Pallas path so the kernel is actually exercised on this size.
    result = rmse_loss(x, y, min_pallas_elements=0)
    jax.block_until_ready(result)
    ref = jnp.sqrt(jnp.mean((x - y) ** 2))
    assert jnp.allclose(result, ref, rtol=1e-5, atol=1e-6), (result, ref)

    # Default dispatch (small-n jnp fallback) must agree too.
    result_fb = rmse_loss(x, y)
    jax.block_until_ready(result_fb)
    assert jnp.allclose(result_fb, ref, rtol=1e-5, atol=1e-6), (result_fb, ref)

    # Non-128-multiple element count: exercises the lane-pad path of the kernel.
    shape2 = (3, 5, 31, 33)
    x2 = jax.random.normal(kx2, shape2, dtype=jnp.float32)
    y2 = jax.random.normal(ky2, shape2, dtype=jnp.float32)
    result2 = rmse_loss(x2, y2, min_pallas_elements=0)
    jax.block_until_ready(result2)
    ref2 = jnp.sqrt(jnp.mean((x2 - y2) ** 2))
    assert jnp.allclose(result2, ref2, rtol=1e-5, atol=1e-6), (result2, ref2)

    print("KERNEL_OK")
</pallas_src>

<mosaic_0001>
module attributes {stable_mosaic.version = 11 : i64} {
  func.func @_rmse_kernel(%arg0: i32, %arg1: i32, %arg2: memref<16x128xf32, #tpu.memory_space<vmem>>, %arg3: memref<16x128xf32, #tpu.memory_space<vmem>>, %arg4: memref<1x8x128xf32, #tpu.memory_space<vmem>>) attributes {dimension_semantics = [#tpu.dimension_semantics<parallel>, #tpu.dimension_semantics<arbitrary>], iteration_bounds = array<i64: 1, 1>, scalar_prefetch = 0 : i64, scratch_operands = 0 : i64, tpu.core_type = #tpu.core_type<tc>, window_params = [{transform_indices = @transform_0, window_bounds = array<i64: 16, 128>}, {transform_indices = @transform_1, window_bounds = array<i64: 16, 128>}, {transform_indices = @transform_2, window_bounds = array<i64: 1, 8, 128>}]} {
    %c0_i32 = arith.constant 0 : i32
    %0 = arith.cmpi eq, %arg1, %c0_i32 : i32
    %1 = arith.extui %0 : i1 to i32
    %c0_i32_0 = arith.constant 0 : i32
    %2 = arith.cmpi ne, %1, %c0_i32_0 : i32
    scf.if %2 {
      %cst_10 = arith.constant 0.000000e+00 : f32
      %19 = vector.broadcast %cst_10 : f32 to vector<1x8x128xf32>
      %c0_11 = arith.constant 0 : index
      %c0_12 = arith.constant 0 : index
      %c0_13 = arith.constant 0 : index
      %20 = vector.load %arg4[%c0_11, %c0_12, %c0_13] : memref<1x8x128xf32, #tpu.memory_space<vmem>>, vector<1x8x128xf32>
      tpu.vector_store %arg4[%c0_11, %c0_12, %c0_13], %19 {strides = array<i32>} : memref<1x8x128xf32, #tpu.memory_space<vmem>>, vector<1x8x128xf32>,
    } else {
    }
    %cst = arith.constant 0.000000e+00 : f32
    %3 = vector.broadcast %cst : f32 to vector<8x128xf32>
    %c0_i32_1 = arith.constant 0 : i32
    %c16_i32 = arith.constant 16 : i32
    %4 = arith.muli %c0_i32_1, %c16_i32 : i32
    %5 = tpu.assume_multiple %4, 16 : i32
    %6 = arith.index_cast %5 : i32 to index
    %c0 = arith.constant 0 : index
    %7 = vector.load %arg2[%6, %c0] : memref<16x128xf32, #tpu.memory_space<vmem>>, vector<16x128xf32>
    %8 = arith.index_cast %5 : i32 to index
    %c0_2 = arith.constant 0 : index
    %9 = vector.load %arg3[%8, %c0_2] : memref<16x128xf32, #tpu.memory_space<vmem>>, vector<16x128xf32>
    %10 = arith.subf %7, %9 : vector<16x128xf32>
    %11 = arith.mulf %10, %10 : vector<16x128xf32>
    %12 = vector.shape_cast %11 : vector<16x128xf32> to vector<2x8x128xf32>
    %cst_3 = arith.constant dense<0.000000e+00> : vector<8x128xf32>
    %13 = vector.multi_reduction <add>, %12, %cst_3 [0] : vector<2x8x128xf32> to vector<8x128xf32>
    %14 = arith.addf %3, %13 : vector<8x128xf32>
    %c1_i32 = arith.constant 1 : i32
    %c0_4 = arith.constant 0 : index
    %c0_5 = arith.constant 0 : index
    %c0_6 = arith.constant 0 : index
    %15 = vector.load %arg4[%c0_4, %c0_5, %c0_6] : memref<1x8x128xf32, #tpu.memory_space<vmem>>, vector<1x8x128xf32>
    %16 = vector.shape_cast %14 : vector<8x128xf32> to vector<1x8x128xf32>
    %17 = arith.addf %15, %16 : vector<1x8x128xf32>
    %c0_7 = arith.constant 0 : index
    %c0_8 = arith.constant 0 : index
    %c0_9 = arith.constant 0 : index
    %18 = vector.load %arg4[%c0_7, %c0_8, %c0_9] : memref<1x8x128xf32, #tpu.memory_space<vmem>>, vector<1x8x128xf32>
    tpu.vector_store %arg4[%c0_7, %c0_8, %c0_9], %17 {strides = array<i32>} : memref<1x8x128xf32, #tpu.memory_space<vmem>>, vector<1x8x128xf32>,
    return
  }
  func.func @transform_0(%arg0: i32, %arg1: i32) -> (i32, i32) {
    %c1_i32 = arith.constant 1 : i32
    %0 = arith.muli %arg0, %c1_i32 : i32
    %1 = arith.addi %0, %arg1 : i32
    %c0_i32 = arith.constant 0 : i32
    %2 = arith.minsi %1, %c0_i32 : i32
    %c0_i32_0 = arith.constant 0 : i32
    %c0_i32_1 = arith.constant 0 : i32
    return %2, %c0_i32_0 : i32, i32
  }
  func.func @transform_1(%arg0: i32, %arg1: i32) -> (i32, i32) {
    %c1_i32 = arith.constant 1 : i32
    %0 = arith.muli %arg0, %c1_i32 : i32
    %1 = arith.addi %0, %arg1 : i32
    %c0_i32 = arith.constant 0 : i32
    %2 = arith.minsi %1, %c0_i32 : i32
    %c0_i32_0 = arith.constant 0 : i32
    %c0_i32_1 = arith.constant 0 : i32
    return %2, %c0_i32_0 : i32, i32
  }
  func.func @transform_2(%arg0: i32, %arg1: i32) -> (i32, i32, i32) {
    %c0_i32 = arith.constant 0 : i32
    %c0_i32_0 = arith.constant 0 : i32
    %c0_i32_1 = arith.constant 0 : i32
    return %arg0, %c0_i32, %c0_i32_0 : i32, i32, i32
  }
}

</mosaic_0001>

<bundles_post_ra>
// kernel: tpu_custom_call.1
= control target key start
LH: loop header
LB: loop body
LE: loop exit
PB: predicated region body
PF: predicated region fallthrough
CT: control target
= control target key end

     0   :  { %7 = vsyncpa [#allocation3], 0  ;;  %s232_s0 = inlined_call_operand.hbm [shape: f32[16,128], index: 0, kind: input, shape index: {}]   ;;  %s233_s1 = inlined_call_operand.hbm [shape: f32[16,128], index: 1, kind: input, shape index: {}]   ;;  %s234_s2 = inlined_call_operand.hbm [shape: f32[1,8,128], index: 2, kind: output, shape index: {}]  }
   0x1   :  { %8 = vsyncpa [#allocation6], 0 }
   0x2   :  { %9 = vsyncpa [#allocation4], 0  ;;  %s176_s9 = smov [#allocation2]   ;;  %s104_s13 = scalar_lea.hbm %s232_s0, 256 }
   0x3   :  { %s21_s10 = sshll.u32 %s176_s9, 4  ;;  %p105_p0 = scmp.ne.s32.totalorder %s232_s0, %s104_s13  ;;  %s22_s10 = int_to_ptr.vmem [resolvable:$true] %s21_s10 }
   0x4   :  { %p108_p1 = scmp.lt.u32.totalorder %s104_s13, %s232_s0 }
   0x6   :  { %p110_p2 = pnand %p108_p1, %p105_p0 }
   0x8   :  { %113 = shalt.err (!%p110_p2)
}
   0x9   :  { %s114_s18 = scalar_lea.vmem %s22_s10, 256  ;;  %p119_p4 = scmp.lt.s32.totalorder %s22_s10, %s22_s10 }
   0xa   :  { %p115_p3 = scmp.ne.s32.totalorder %s22_s10, %s114_s18  ;;  %p120_p5 = scmp.lt.s32.totalorder %s114_s18, %s114_s18 }
   0xc   :  { %p121_p6 = por %p120_p5, %p119_p4 }
   0xe   :  { %p122_p7 = pnand %p121_p6, %p115_p3 }
  0x10   :  { %125 = shalt.err (!%p122_p7)
}
  0x11   :  { %s177_s19 = smov 128   ;;  %s178_s20 = smov 8  }
  0x12   :  { %27 = dma.hbm_to_vmem [thread:$0]  %s232_s0, 256, %s22_s10, [#allocation3], %s177_s19, %s177_s19, %s178_s20  }
  0x13   :  { %s179_s23 = smov [#allocation5]   ;;  %s126_s27 = scalar_lea.hbm %s233_s1, 256 }
  0x14   :  { %s39_s24 = sshll.u32 %s179_s23, 4  ;;  %p127_p8 = scmp.ne.s32.totalorder %s233_s1, %s126_s27  ;;  %s40_s24 = int_to_ptr.vmem [resolvable:$true] %s39_s24 }
  0x15   :  { %p130_p9 = scmp.lt.u32.totalorder %s126_s27, %s233_s1 }
  0x17   :  { %p132_p10 = pnand %p130_p9, %p127_p8 }
  0x19   :  { %135 = shalt.err (!%p132_p10)
}
  0x1a   :  { %s136_s4 = scalar_lea.vmem %s40_s24, 256  ;;  %p141_p12 = scmp.lt.s32.totalorder %s40_s24, %s40_s24 }
  0x1b   :  { %p137_p11 = scmp.ne.s32.totalorder %s40_s24, %s136_s4  ;;  %p142_p13 = scmp.lt.s32.totalorder %s136_s4, %s136_s4 }
  0x1d   :  { %p143_p0 = por %p142_p13, %p141_p12 }
  0x1f   :  { %p144_p1 = pnand %p143_p0, %p137_p11 }
  0x21   :  { %147 = shalt.err (!%p144_p1)
}
  0x22   :  { %45 = dma.hbm_to_vmem [thread:$0]  %s233_s1, 256, %s40_s24, [#allocation6], %s177_s19, %s177_s19, %s178_s20  }
  0x23   :  { %170 = dma.done.wait [#allocation3], 256  }
  0x24   :  { %171 = vsyncadd [#allocation3], 4294967040 }
  0x25   :  { %172 = dma.done.wait [#allocation6], 256  }
  0x26   :  { %173 = vsyncadd [#allocation6], 4294967040  ;;  %v65_v0 = vld [vmem:[#allocation2] sm:$0xff]  ;;  %v66_v1 = vld [vmem:[#allocation2 + $0x8] sm:$0xff]  ;;  %s180_s6 = smov [#allocation7]  }
  0x27   :  { %v67_v2 = vld [vmem:[#allocation5] sm:$0xff]  ;;  %v68_v3 = vld [vmem:[#allocation5 + $0x8] sm:$0xff]  ;;  %s84_s7 = sshll.u32 %s180_s6, 4  ;;  %s85_s7 = int_to_ptr.vmem [resolvable:$true] %s84_s7 }
  0x28   :  { %v69_v4 = vsub.f32 %v65_v0, %v67_v2  ;;  %v70_v5 = vsub.f32 %v66_v1, %v68_v3  ;;  %s148_s8 = scalar_lea.vmem %s85_s7, 128  ;;  %p153_p3 = scmp.lt.s32.totalorder %s85_s7, %s85_s7 }
  0x29   :  { %p149_p2 = scmp.ne.s32.totalorder %s85_s7, %s148_s8  ;;  %p154_p4 = scmp.lt.s32.totalorder %s148_s8, %s148_s8 }
  0x2a   :  { %v71_v6 = vmul.f32 %v69_v4, %v69_v4  ;;  %v72_v7 = vmul.f32 %v70_v5, %v70_v5 }
  0x2b   :  { %p155_p5 = por %p154_p4, %p153_p3 }
  0x2c   :  { %v73_v8 = vadd.f32 %v72_v7, %v71_v6 }
  0x2d   :  { %p156_p6 = pnand %p155_p5, %p149_p2 }
  0x2e   :  { %77 = vst [vmem:[#allocation7] sm:$0xff] %v73_v8 }
  0x2f   :  { %159 = shalt.err (!%p156_p6)
}
  0x30   :  { %s160_s10 = scalar_lea.hbm %s234_s2, 128 }
  0x31   :  { %p161_p7 = scmp.ne.s32.totalorder %s234_s2, %s160_s10  ;;  %p164_p8 = scmp.lt.u32.totalorder %s160_s10, %s234_s2 }
  0x33   :  { %p166_p9 = pnand %p164_p8, %p161_p7 }
  0x35   :  { %169 = shalt.err (!%p166_p9)
}
  0x36   :  { %87 = dma.vmem_to_hbm [thread:$0]  %s85_s7, 128, %s234_s2, [#allocation4]  }
  0x37   :  { %174 = dma.done.wait [#allocation4], 128  }
  0x38   :  { %175 = vsyncadd [#allocation4], 4294967168 }
  0x39   :  { %91 = vsyncpa [#allocation3], 1 }
  0x3a   :  { %92 = vsyncpa [#allocation6], 1 }
  0x3b   :  { %93 = vsyncpa [#allocation4], 1 }

</bundles_post_ra>
